<compile_context>
chip_gen: v5e
topology: v5e:2x2
jax: 0.10.0
libtpu: 0.0.40
codegen_flags: <defaults>
</compile_context>

<pallas_src>
import functools
import math

import jax
import jax.numpy as jnp
from jax import lax
from jax.experimental import pallas as pl
from jax.experimental.pallas import tpu as pltpu

# Scoped-VMEM budget: <= v7x's 64 MiB physical, raises v5e's 16 MiB scoped default.
VMEM_LIMIT_BYTES = 48 * 1024 * 1024


def _tile(dim, preferred):
    """Largest power-of-two-ish tile <= preferred that evenly divides dim."""
    if dim <= preferred:
        return dim
    t = preferred
    while t >= 8:
        if dim % t == 0:
            return t
        t //= 2
    # TODO(synk): pad ragged sequence lengths instead of falling back to one mega-tile.
    return dim


# ---------------------------------------------------------------------------
# Tiled linear kernel (bf16 MXU, f32 accumulate, M and N tiled)
# ---------------------------------------------------------------------------

def _linear_kernel(x_ref, w_ref, b_ref, o_ref):
    acc = jnp.dot(x_ref[...].astype(jnp.bfloat16), w_ref[...],
                  preferred_element_type=jnp.float32)          # bf16 MXU, f32 acc
    o_ref[...] = (acc + b_ref[...]).astype(o_ref.dtype)


def pallas_linear(x2d, w_bf16, b_f32, out_dtype):
    """x2d: (M, K), w_bf16: (K, N) bf16, b_f32: (N,) f32 -> (M, N) out_dtype.

    Both M and N are tiled so the weight working set stays bounded regardless of
    model width (v7x 64 MiB VMEM safe); grid axes are parallel (megacore).
    """
    M, K = x2d.shape
    N = w_bf16.shape[1]
    tm = _tile(M, 256)
    tn = _tile(N, 512)
    # TODO(synk): weight/bias blocks are constant along the M axis; single-buffering
    # them (pl.Buffered(1)) would halve their VMEM footprint.
    return pl.pallas_call(
        _linear_kernel,
        out_shape=jax.ShapeDtypeStruct((M, N), out_dtype),
        grid=(M // tm, N // tn),
        in_specs=[
            pl.BlockSpec((tm, K), lambda i, j: (i, 0)),
            pl.BlockSpec((K, tn), lambda i, j: (0, j)),
            pl.BlockSpec((1, tn), lambda i, j: (0, j)),
        ],
        out_specs=pl.BlockSpec((tm, tn), lambda i, j: (i, j)),
        compiler_params=pltpu.CompilerParams(
            dimension_semantics=("parallel", "parallel"),
            vmem_limit_bytes=VMEM_LIMIT_BYTES),
    )(x2d, w_bf16, b_f32.reshape(1, N))


# ---------------------------------------------------------------------------
# Flash-attention kernel (online softmax, all heads per q-tile, lane-dense out)
# ---------------------------------------------------------------------------

def _flash_mha_kernel(*refs, num_heads, tq, tk, has_mask, causal):
    if has_mask:
        q_ref, k_ref, v_ref, mask_ref, o_ref, m_sc, l_sc, acc_sc = refs
    else:
        q_ref, k_ref, v_ref, o_ref, m_sc, l_sc, acc_sc = refs
        mask_ref = None

    qi = pl.program_id(1)
    ki = pl.program_id(2)

    @pl.when(ki == 0)
    def _init():
        m_sc[...] = jnp.full_like(m_sc, -jnp.inf)
        l_sc[...] = jnp.zeros_like(l_sc)
        acc_sc[...] = jnp.zeros_like(acc_sc)

    def _compute():
        q = q_ref[...]                  # (tq, H, d_k) bf16, 1/sqrt(d_k) already folded
        k = k_ref[...]                  # (tk, H, d_k) bf16
        v = v_ref[...]                  # (tk, H, d_k) bf16

        # Mask bias computed ONCE per grid step, shared across heads (mask.unsqueeze(1)).
        if has_mask:
            bias = jnp.where(mask_ref[...] == 0, -1e9, 0.0).astype(jnp.float32)
        elif causal:
            rows = qi * tq + lax.broadcasted_iota(jnp.int32, (tq, tk), 0)
            cols = ki * tk + lax.broadcasted_iota(jnp.int32, (tq, tk), 1)
            bias = jnp.where(cols > rows, -1e9, 0.0).astype(jnp.float32)
        else:
            bias = None

        dims_qk = (((1,), (1,)), ((), ()))   # contract last axes: no explicit K transpose
        dims_pv = (((1,), (0,)), ((), ()))

        # TODO(synk): for num_heads >= 8 chunk this loop (lax.fori_loop over head
        # groups) to bound vreg live ranges and avoid spills; H is small here.
        for h in range(num_heads):
            s = lax.dot_general(q[:, h, :], k[:, h, :], dims_qk,
                                preferred_element_type=jnp.float32)   # (tq, tk) f32
            if bias is not None:
                s = s + bias

            m_prev = m_sc[h]                                           # (tq, 1)
            m_new = jnp.maximum(m_prev, jnp.max(s, axis=-1, keepdims=True))
            alpha = jnp.exp(m_prev - m_new)
            p = jnp.exp(s - m_new)                                     # (tq, tk) f32

            l_sc[h] = alpha * l_sc[h] + jnp.sum(p, axis=-1, keepdims=True)
            acc_sc[h] = alpha * acc_sc[h] + lax.dot_general(
                p.astype(jnp.bfloat16), v[:, h, :], dims_pv,
                preferred_element_type=jnp.float32)                    # (tq, d_k)
            m_sc[h] = m_new

    if causal:
        # Skip kv tiles entirely above the diagonal: ~2x fewer MXU dots / exps.
        pl.when(ki * tk <= qi * tq + (tq - 1))(_compute)
    else:
        _compute()

    @pl.when(ki == pl.num_programs(2) - 1)
    def _finalize():
        # Exact division (once per q tile -> negligible cost, full f32 accuracy).
        # Heads concatenated so the store is one lane-dense (tq, H*d_k) slab.
        cols = [acc_sc[h] / l_sc[h] for h in range(num_heads)]
        o_ref[...] = jnp.concatenate(cols, axis=-1).astype(o_ref.dtype)


def pallas_flash_attention(q4, k4, v4, mask, *, causal):
    """q4: (B, Sq, H, d_k), k4/v4: (B, Skv, H, d_k) bf16, mask: (B, Sq, Skv) int8 or None.

    Returns (B, Sq, H*d_k) bf16 with heads already concatenated (ready for Wo).
    """
    B, Sq, H, d_k = q4.shape
    Skv = k4.shape[1]
    D = H * d_k
    tq = _tile(Sq, 256)     # 256 fills the 2x256x256 MXU on v6e/v7x; v5e still fine
    tk = _tile(Skv, 256)
    # v7x megacore: make sure the parallel axes give both TensorCores work.
    if B * (Sq // tq) < 2 and tq > 8 and tq % 2 == 0 and Sq % (tq // 2) == 0:
        tq //= 2

    has_mask = mask is not None
    kernel = functools.partial(_flash_mha_kernel, num_heads=H, tq=tq, tk=tk,
                               has_mask=has_mask, causal=causal)

    in_specs = [
        pl.BlockSpec((None, tq, H, d_k), lambda b, qi, ki: (b, qi, 0, 0)),
        pl.BlockSpec((None, tk, H, d_k), lambda b, qi, ki: (b, ki, 0, 0)),
        pl.BlockSpec((None, tk, H, d_k), lambda b, qi, ki: (b, ki, 0, 0)),
    ]
    inputs = [q4, k4, v4]
    if has_mask:
        in_specs.append(pl.BlockSpec((None, tq, tk), lambda b, qi, ki: (b, qi, ki)))
        inputs.append(mask)

    return pl.pallas_call(
        kernel,
        out_shape=jax.ShapeDtypeStruct((B, Sq, D), q4.dtype),
        grid=(B, Sq // tq, Skv // tk),
        in_specs=in_specs,
        out_specs=pl.BlockSpec((None, tq, D), lambda b, qi, ki: (b, qi, 0)),
        scratch_shapes=[
            pltpu.VMEM((H, tq, 1), jnp.float32),    # running row max  m
            pltpu.VMEM((H, tq, 1), jnp.float32),    # running denom    l
            pltpu.VMEM((H, tq, d_k), jnp.float32),  # running context  acc
        ],
        compiler_params=pltpu.CompilerParams(
            dimension_semantics=("parallel", "parallel", "arbitrary"),
            vmem_limit_bytes=VMEM_LIMIT_BYTES),
    )(*inputs)


# ---------------------------------------------------------------------------
# MultiHeadedAttention forward
# ---------------------------------------------------------------------------

def multi_headed_attention(params, query, key, value, mask, num_heads, *,
                           is_causal=False):
    B, Sq, D = query.shape
    Skv = key.shape[1]
    d_k = D // num_heads
    inv_sqrt_dk = 1.0 / math.sqrt(d_k)

    # 1/sqrt(d_k) folded into Wq/bq at trace time; weights streamed in bf16.
    wq = (params["wq"] * inv_sqrt_dk).astype(jnp.bfloat16)
    bq = params["bq"] * inv_sqrt_dk
    wk = params["wk"].astype(jnp.bfloat16)
    wv = params["wv"].astype(jnp.bfloat16)
    wo = params["wo"].astype(jnp.bfloat16)

    xq = query.reshape(B * Sq, D)
    xk = key.reshape(B * Skv, D)
    xv = value.reshape(B * Skv, D)

    if query is key and key is value:
        # Self-attention with shared activations: stream x ONCE against the
        # concatenated (D, 3D) weight -> one launch, one activation read, wide MXU tiles.
        w_qkv = jnp.concatenate([wq, wk, wv], axis=1)
        b_qkv = jnp.concatenate([bq, params["bk"], params["bv"]])
        qkv = pallas_linear(xq, w_qkv, b_qkv, jnp.bfloat16)          # (B*S, 3D)
        q2, k2, v2 = qkv[:, :D], qkv[:, D:2 * D], qkv[:, 2 * D:]
    else:
        q2 = pallas_linear(xq, wq, bq, jnp.bfloat16)
        k2 = pallas_linear(xk, wk, params["bk"], jnp.bfloat16)
        v2 = pallas_linear(xv, wv, params["bv"], jnp.bfloat16)

    # Head split is a free contiguous reshape; the .transpose(1, 2) of the PyTorch
    # module happens inside the attention kernel (per-head slice of the block).
    q4 = q2.reshape(B, Sq, num_heads, d_k)
    k4 = k2.reshape(B, Skv, num_heads, d_k)
    v4 = v2.reshape(B, Skv, num_heads, d_k)

    if is_causal:
        mask = None                      # causal mask generated in-kernel (zero HBM traffic)
    elif mask is not None:
        mask = mask.astype(jnp.int8)     # int8 mask: 4x less HBM traffic than f32

    # TODO(synk): nn.Dropout on the attention probabilities is stochastic (train mode);
    # this kernel implements eval/inference semantics (dropout disabled).
    ctx = pallas_flash_attention(q4, k4, v4, mask, causal=is_causal)  # (B, Sq, D) bf16

    # TODO(synk): optionally fuse Wo into the attention finalize when D^2 bf16 fits VMEM.
    out2 = pallas_linear(ctx.reshape(B * Sq, D), wo, params["bo"], query.dtype)
    return out2.reshape(B, Sq, D)


# ---------------------------------------------------------------------------
# Pure-JAX f32 reference (no dropout) for correctness checking
# ---------------------------------------------------------------------------

def reference_mha(params, query, key, value, mask, num_heads):
    B, Sq, D = query.shape
    d_k = D // num_heads

    def proj(x, w, b):
        return (x @ w + b).reshape(B, -1, num_heads, d_k).transpose(0, 2, 1, 3)

    Q = proj(query, params["wq"], params["bq"])
    K = proj(key, params["wk"], params["bk"])
    V = proj(value, params["wv"], params["bv"])
    scores = jnp.einsum("bhqd,bhkd->bhqk", Q, K) / math.sqrt(d_k)
    if mask is not None:
        scores = jnp.where(mask[:, None, :, :] == 0, -1e9, scores)
    p = jax.nn.softmax(scores, axis=-1)
    x = jnp.einsum("bhqk,bhkd->bhqd", p, V)
    x = x.transpose(0, 2, 1, 3).reshape(B, -1, D)
    return x @ params["wo"] + params["bo"]


# ---------------------------------------------------------------------------
# Main
# ---------------------------------------------------------------------------

if __name__ == "__main__":
    B, S, D, H = 2, 8, 32, 4      # batch, seq, d_model, num_heads

    root = jax.random.PRNGKey(0)
    keys = jax.random.split(root, 12)

    init = 1.0 / math.sqrt(D)     # deterministic "Linear-like" init
    params = {
        "wq": jax.random.uniform(keys[0], (D, D), jnp.float32, -init, init),
        "bq": jax.random.uniform(keys[1], (D,),   jnp.float32, -init, init),
        "wk": jax.random.uniform(keys[2], (D, D), jnp.float32, -init, init),
        "bk": jax.random.uniform(keys[3], (D,),   jnp.float32, -init, init),
        "wv": jax.random.uniform(keys[4], (D, D), jnp.float32, -init, init),
        "bv": jax.random.uniform(keys[5], (D,),   jnp.float32, -init, init),
        "wo": jax.random.uniform(keys[6], (D, D), jnp.float32, -init, init),
        "bo": jax.random.uniform(keys[7], (D,),   jnp.float32, -init, init),
    }

    query = jax.random.normal(keys[8],  (B, S, D), jnp.float32)
    key   = jax.random.normal(keys[9],  (B, S, D), jnp.float32)
    value = jax.random.normal(keys[10], (B, S, D), jnp.float32)

    # mask: (B, S, S) int8, 1 = attend, 0 = masked (causal-style, deterministic).
    mask = jnp.tril(jnp.ones((S, S), jnp.int8))[None].repeat(B, axis=0)

    # Tolerance accounts for bf16 MXU operands (f32 accumulation) vs the f32 reference.
    TOL = dict(atol=3e-2, rtol=3e-2)

    # 1) Explicit mask path (faithful translation of the module).
    out = jax.block_until_ready(multi_headed_attention(params, query, key, value, mask, H))
    ref = reference_mha(params, query, key, value, mask, H)
    assert out.shape == (B, S, D)
    assert jnp.allclose(out, ref, **TOL), "explicit-mask path mismatch vs reference"

    # 2) Causal fast path (in-kernel mask, kv-tile skipping) against the same reference.
    out_causal = jax.block_until_ready(
        multi_headed_attention(params, query, key, value, None, H, is_causal=True))
    assert jnp.allclose(out_causal, ref, **TOL), "causal fast path mismatch vs reference"

    # 3) No-mask path (no mask tensor materialized or streamed).
    out_nomask = jax.block_until_ready(
        multi_headed_attention(params, query, key, value, None, H))
    ref_nomask = reference_mha(params, query, key, value, None, H)
    assert jnp.allclose(out_nomask, ref_nomask, **TOL), "no-mask path mismatch vs reference"

    # 4) Shared-activation self-attention (single fused (D, 3D) QKV projection launch).
    out_self = jax.block_until_ready(
        multi_headed_attention(params, query, query, query, mask, H))
    ref_self = reference_mha(params, query, query, query, mask, H)
    assert jnp.allclose(out_self, ref_self, **TOL), "fused-QKV path mismatch vs reference"

    print("KERNEL_OK")
</pallas_src>

<mosaic_0001>
module attributes {stable_mosaic.version = 11 : i64} {
  func.func @_linear_kernel(%arg0: i32, %arg1: i32, %arg2: memref<16x32xf32, #tpu.memory_space<vmem>>, %arg3: memref<32x32xbf16, #tpu.memory_space<vmem>>, %arg4: memref<1x32xf32, #tpu.memory_space<vmem>>, %arg5: memref<16x32xbf16, #tpu.memory_space<vmem>>) attributes {dimension_semantics = [#tpu.dimension_semantics<parallel>, #tpu.dimension_semantics<parallel>], iteration_bounds = array<i64: 1, 1>, scalar_prefetch = 0 : i64, scratch_operands = 0 : i64, tpu.core_type = #tpu.core_type<tc>, window_params = [{transform_indices = @transform_0, window_bounds = array<i64: 16, 32>}, {transform_indices = @transform_1, window_bounds = array<i64: 32, 32>}, {transform_indices = @transform_2, window_bounds = array<i64: 1, 32>}, {transform_indices = @transform_3, window_bounds = array<i64: 16, 32>}]} {
    %c0 = arith.constant 0 : index
    %c0_0 = arith.constant 0 : index
    %0 = vector.load %arg2[%c0, %c0_0] : memref<16x32xf32, #tpu.memory_space<vmem>>, vector<16x32xf32>
    %1 = arith.truncf %0 : vector<16x32xf32> to vector<16x32xbf16>
    %c0_1 = arith.constant 0 : index
    %c0_2 = arith.constant 0 : index
    %2 = vector.load %arg3[%c0_1, %c0_2] : memref<32x32xbf16, #tpu.memory_space<vmem>>, vector<32x32xbf16>
    %cst = arith.constant dense<0.000000e+00> : vector<16x32xf32>
    %3 = tpu.matmul %1, %2, %cst {dimension_numbers = #tpu.dot_dimension_numbers<[1], [0], [0], [1], [0, 0, 1, 1], [], []>} : vector<16x32xbf16>, vector<32x32xbf16>, vector<16x32xf32> -> vector<16x32xf32>
    %c0_3 = arith.constant 0 : index
    %c0_4 = arith.constant 0 : index
    %4 = vector.load %arg4[%c0_3, %c0_4] : memref<1x32xf32, #tpu.memory_space<vmem>>, vector<1x32xf32>
    %5 = vector.broadcast %4 : vector<1x32xf32> to vector<16x32xf32>
    %6 = arith.addf %3, %5 : vector<16x32xf32>
    %7 = arith.truncf %6 : vector<16x32xf32> to vector<16x32xbf16>
    %c0_5 = arith.constant 0 : index
    %c0_6 = arith.constant 0 : index
    %8 = vector.load %arg5[%c0_5, %c0_6] : memref<16x32xbf16, #tpu.memory_space<vmem>>, vector<16x32xbf16>
    tpu.vector_store %arg5[%c0_5, %c0_6], %7 {strides = array<i32>} : memref<16x32xbf16, #tpu.memory_space<vmem>>, vector<16x32xbf16>,
    return
  }
  func.func @transform_0(%arg0: i32, %arg1: i32) -> (i32, i32) {
    %c0_i32 = arith.constant 0 : i32
    %c0_i32_0 = arith.constant 0 : i32
    return %arg0, %c0_i32 : i32, i32
  }
  func.func @transform_1(%arg0: i32, %arg1: i32) -> (i32, i32) {
    %c0_i32 = arith.constant 0 : i32
    %c0_i32_0 = arith.constant 0 : i32
    return %c0_i32, %arg1 : i32, i32
  }
  func.func @transform_2(%arg0: i32, %arg1: i32) -> (i32, i32) {
    %c0_i32 = arith.constant 0 : i32
    %c0_i32_0 = arith.constant 0 : i32
    return %c0_i32, %arg1 : i32, i32
  }
  func.func @transform_3(%arg0: i32, %arg1: i32) -> (i32, i32) {
    %c0_i32 = arith.constant 0 : i32
    return %arg0, %arg1 : i32, i32
  }
}

</mosaic_0001>

<bundles_post_ra>
// kernel: tpu_custom_call.1
= control target key start
LH: loop header
LB: loop body
LE: loop exit
PB: predicated region body
PF: predicated region fallthrough
CT: control target
= control target key end

     0   :  { %8 = vsyncpa [#allocation3], 0  ;;  %s256_s0 = inlined_call_operand.hbm [shape: f32[16,32], index: 0, kind: input, shape index: {}]   ;;  %s257_s1 = inlined_call_operand.hbm [shape: bf16[32,32], index: 1, kind: input, shape index: {}]   ;;  %s258_s2 = inlined_call_operand.vmem [shape: f32[1,32], index: 2, kind: input, shape index: {}]   ;;  %s259_s3 = inlined_call_operand.hbm [shape: bf16[16,32], index: 3, kind: output, shape index: {}]  }
   0x1   :  { %9 = vsyncpa [#allocation6], 0 }
   0x2   :  { %10 = vsyncpa [#allocation4], 0  ;;  %s15_s14 = sshll.u32 %s256_s0, 4  ;;  %s211_s15 = smov [#allocation2]   ;;  %s16_s14 = int_to_ptr.hbm [resolvable:$true] %s15_s14 }
   0x3   :  { %s17_s16 = sshll.u32 %s211_s15, 4  ;;  %s28_s19 = sshll.u32 %s257_s1, 4  ;;  %s18_s16 = int_to_ptr.vmem [resolvable:$true] %s17_s16  ;;  %s29_s19 = int_to_ptr.hbm [resolvable:$true] %s28_s19 }
   0x4   :  { %s212_s20 = smov 128   ;;  %s213_s21 = smov 8  }
   0x5   :  { %23 = dma.hbm_to_vmem [thread:$0]  %s16_s14, 256, %s18_s16, [#allocation3], %s212_s20, %s212_s20, %s213_s21  }
   0x6   :  { %s214_s22 = smov [#allocation5]   ;;  %s215_s24 = smov 64  }
   0x7   :  { %s30_s23 = sshll.u32 %s214_s22, 4  ;;  %s216_s25 = smov 4   ;;  %s31_s23 = int_to_ptr.vmem [resolvable:$true] %s30_s23 }
   0x8   :  { %36 = dma.hbm_to_vmem [thread:$0]  %s29_s19, 256, %s31_s23, [#allocation6], %s215_s24, %s215_s24, %s216_s25  }
   0x9   :  { %205 = dma.done.wait [#allocation3], 256  }
   0xa   :  { %206 = vsyncadd [#allocation3], 4294967040 }
   0xb   :  { %207 = dma.done.wait [#allocation6], 256  }
   0xc   :  { %208 = vsyncadd [#allocation6], 4294967040  ;;  %v124_v0 = vld [vmem:[#allocation5 + $0x8] sm:$0xff]  ;;  %v123_v1 = vld [vmem:[#allocation5] sm:$0xff]  ;;  %vm71_vm0 = vcmask 261120   ;;  %vm91_vm1 = vcmask 257024  }
   0xd   :  { %81 = vmatpush.bf16.msra.mxu0 %v124_v0  ;;  %v48_v2 = vld [vmem:[#allocation2] sm:$0xff]  ;;  %v49_v3 = vld [vmem:[#allocation2 + $0x8] sm:$0xff]  ;;  %s217_s26 = smov [#allocation7]   ;;  %s100_s30 = sshll.u32 %s259_s3, 4  ;;  %s101_s30 = int_to_ptr.hbm [resolvable:$true] %s100_s30 }
   0xe   :  { %v50_v4 = vpack.c.bf16 %v49_v3, %v48_v2  ;;  %v132_v5 = vld [vmem:[%s258_s2] ss:$0 sm:$0xff]  ;;  %s98_s27 = sshll.u32 %s217_s26, 4  ;;  %s99_s27 = int_to_ptr.vmem [resolvable:$true] %s98_s27 }
  0x11   :  { %82 = vmatpush.bf16.msra.mxu0 %v123_v1 }
  0x14   :  { %122 = vmatmul.msk.bf16.vlgmr.msra.gmra.mxu0 %vm71_vm0, %v50_v4 }
  0x91   :  { %v84_v6 = vpop.f32.mrf.mxu0 }
  0x92   :  { %v85_v7 = vadd.f32 %v132_v5, %v84_v6 }
  0x94   :  { %v89_v8 = vpack.c.bf16 %v85_v7, %v85_v7 }
  0x96   :  { %92 = vst.msk [vmem:[#allocation7] sm:$0xf] %vm91_vm1, %v89_v8 }
  0x99   :  { %v86_v9 = vpop.f32.mrf.mxu0 }
  0x9a   :  { %v87_v10 = vadd.f32 %v132_v5, %v86_v9 }
  0x9c   :  { %v90_v11 = vpack.c.bf16 %v87_v10, %v87_v10 }
  0x9e   :  { %93 = vst.msk [vmem:[#allocation7 + $0x4] sm:$0xf] %vm91_vm1, %v90_v11 }
  0x9f   :  { %106 = dma.vmem_to_hbm [thread:$0]  %s99_s27, 128, %s101_s30, [#allocation4], %s215_s24, %s215_s24, %s216_s25  }
  0xa0   :  { %209 = dma.done.wait [#allocation4], 128  }
  0xa1   :  { %210 = vsyncadd [#allocation4], 4294967168 }
  0xa2   :  { %111 = vsyncpa [#allocation3], 1 }
  0xa3   :  { %112 = vsyncpa [#allocation6], 1 }
  0xa4   :  { %113 = vsyncpa [#allocation4], 1 }

</bundles_post_ra>
